<compile_context>
chip_gen: v7x
topology: tpu7x:2x2x1
jax: 0.10.0
libtpu: 0.0.40
codegen_flags: <defaults>
</compile_context>

<pallas_src>
import math
import functools

import numpy as np
import jax
import jax.numpy as jnp
from jax.experimental import pallas as pl
from jax.experimental.pallas import tpu as pltpu


# ----------------------------------------------------------------------------
# helpers
# ----------------------------------------------------------------------------
def _round_up(x, m):
    return ((x + m - 1) // m) * m


def _hz_to_mel(freq, mel_scale="slaney"):
    if mel_scale == "htk":
        return 2595.0 * math.log10(1.0 + freq / 700.0)
    f_min, f_sp = 0.0, 200.0 / 3
    mels = (freq - f_min) / f_sp
    min_log_hz = 1000.0
    min_log_mel = (min_log_hz - f_min) / f_sp
    logstep = math.log(6.4) / 27.0
    if freq >= min_log_hz:
        mels = min_log_mel + math.log(freq / min_log_hz) / logstep
    return mels


def _mel_to_hz(mels, mel_scale="slaney"):
    mels = np.asarray(mels, dtype=np.float64)
    if mel_scale == "htk":
        return 700.0 * (10.0 ** (mels / 2595.0) - 1.0)
    f_min, f_sp = 0.0, 200.0 / 3
    freqs = f_min + f_sp * mels
    min_log_hz = 1000.0
    min_log_mel = (min_log_hz - f_min) / f_sp
    logstep = math.log(6.4) / 27.0
    log_t = mels >= min_log_mel
    freqs[log_t] = min_log_hz * np.exp(logstep * (mels[log_t] - min_log_mel))
    return freqs


def melscale_fbanks(n_freqs, f_min, f_max, n_mels, sample_rate,
                    norm="slaney", mel_scale="slaney"):
    """NumPy port of torchaudio.functional.melscale_fbanks -> (n_freqs, n_mels)."""
    all_freqs = np.linspace(0.0, sample_rate // 2, n_freqs)
    m_min = _hz_to_mel(f_min, mel_scale)
    m_max = _hz_to_mel(f_max, mel_scale)
    m_pts = np.linspace(m_min, m_max, n_mels + 2)
    f_pts = _mel_to_hz(m_pts, mel_scale)

    f_diff = f_pts[1:] - f_pts[:-1]                          # (n_mels + 1,)
    slopes = f_pts[None, :] - all_freqs[:, None]             # (n_freqs, n_mels + 2)
    down_slopes = (-1.0 * slopes[:, :-2]) / f_diff[:-1]
    up_slopes = slopes[:, 2:] / f_diff[1:]
    fb = np.maximum(0.0, np.minimum(down_slopes, up_slopes))

    if norm == "slaney":
        enorm = 2.0 / (f_pts[2: n_mels + 2] - f_pts[:n_mels])
        fb = fb * enorm[None, :]
    return fb.astype(np.float32)


# ----------------------------------------------------------------------------
# Deterministic parameter / buffer construction (equivalent of __init__)
# ----------------------------------------------------------------------------
def make_buffers(mel_params, compute_dtype=jnp.float32):
    """compute_dtype=jnp.bfloat16 roughly triples MXU throughput on all TPU
    generations (accumulation stays f32); keep f32 when ~1e-3 accuracy is
    required."""
    n_fft = mel_params["n_fft"]
    win_length = mel_params.get("win_length", n_fft)
    sample_rate = mel_params["sample_rate"]
    n_stft = n_fft // 2 + 1
    f_min = mel_params.get("mel_fmin", 0.0)
    f_max_param = mel_params.get("mel_fmax")
    f_max = f_max_param if f_max_param is not None else sample_rate / 2.0
    n_mels = mel_params["num_mels"]

    # Window (periodic), float64 for the fold
    window_fn = mel_params.get("window_fn", "hann_window")
    n = np.arange(win_length, dtype=np.float64)
    if window_fn == "hamming_window":
        window64 = 0.54 - 0.46 * np.cos(2.0 * math.pi * n / win_length)
    else:  # hann (default + fallback, matching the torch module)
        window64 = 0.5 - 0.5 * np.cos(2.0 * math.pi * n / win_length)

    fbanks = melscale_fbanks(n_stft, f_min, f_max, n_mels, sample_rate,
                             norm=mel_params.get("norm", "slaney"),
                             mel_scale=mel_params.get("mel_scale", "slaney"))

    # DFT tables; angle in float64 (k*n up to ~2e6 for n_fft=2048 would lose
    # ~1e-3 rad of phase in float32), cast to float32 at the end.
    k = np.arange(n_stft, dtype=np.float64)
    nn = np.arange(n_fft, dtype=np.float64)
    angle = -2.0 * math.pi * k[:, None] * nn[None, :] / n_fft
    rfft_real_t64 = np.cos(angle).T                 # (n_fft, n_stft)
    rfft_imag_t64 = np.sin(angle).T                 # (n_fft, n_stft)

    # Trailing frequency bins with all-zero mel weight (typically the Nyquist
    # bin) can never contribute -> drop them exactly before lane-padding.
    nz_rows = np.flatnonzero(fbanks.any(axis=1))
    n_stft_eff = int(nz_rows[-1]) + 1 if nz_rows.size else n_stft

    # Effective frame length seen by the DFT:
    #   n_fft >  win_length: frames zero-padded, window is zero there too once
    #                        folded -> drop those rows (K = win_length)
    #   n_fft <  win_length: frames trimmed to n_fft (K = n_fft)
    K = min(win_length, n_fft)
    win_k = window64[:K]

    n_stft_pad = _round_up(n_stft_eff, 128)
    n_mels_pad = _round_up(n_mels, 128)

    w_real = np.zeros((K, n_stft_pad), dtype=np.float32)
    w_imag = np.zeros((K, n_stft_pad), dtype=np.float32)
    w_real[:, :n_stft_eff] = (win_k[:, None] *
                              rfft_real_t64[:K, :n_stft_eff]).astype(np.float32)
    w_imag[:, :n_stft_eff] = (win_k[:, None] *
                              rfft_imag_t64[:K, :n_stft_eff]).astype(np.float32)

    fbank_pad = np.zeros((n_stft_pad, n_mels_pad), dtype=np.float32)
    fbank_pad[:n_stft_eff, :n_mels] = fbanks[:n_stft_eff]

    cdt = np.dtype(compute_dtype)
    return dict(
        # raw buffers matching the torch module (used by the pure-JAX reference)
        window=jnp.asarray(window64.astype(np.float32)),
        mel_fbanks=jnp.asarray(fbanks),
        rfft_mat_real_t=jnp.asarray(rfft_real_t64.astype(np.float32)),
        rfft_mat_imag_t=jnp.asarray(rfft_imag_t64.astype(np.float32)),
        # fused kernel constants (window folded, trailing zero bins trimmed,
        # lane-padded)
        w_real=jnp.asarray(w_real).astype(cdt),      # (K, n_stft_pad)
        w_imag=jnp.asarray(w_imag).astype(cdt),      # (K, n_stft_pad)
        fbank_pad=jnp.asarray(fbank_pad).astype(cdt),  # (n_stft_pad, n_mels_pad)
        compute_dtype=cdt,
        n_stft=n_stft, n_stft_pad=n_stft_pad,
        n_mels=n_mels, n_mels_pad=n_mels_pad,
        frame_len=K,
    )


# ----------------------------------------------------------------------------
# Generation-aware tiling / VMEM budgeting
# ----------------------------------------------------------------------------
def _device_config():
    try:
        kind = jax.devices()[0].device_kind.lower()
    except Exception:
        kind = ""
    if any(t in kind for t in ("v4", "v5", "v6")):
        # 128 MiB physical VMEM: bigger row tiles, generous scoped limit.
        return dict(tm_max=512, vmem_budget=80 * 2**20, vmem_limit=96 * 2**20)
    # v7x (64 MiB / TC) or unknown: conservative settings (safe everywhere).
    return dict(tm_max=256, vmem_budget=40 * 2**20, vmem_limit=48 * 2**20)


def _choose_tiling(rows, K, n_stft_pad, n_mels_pad, itemsize, tm_max, budget):
    """Pick (TM, CN, n_chunks) with CN * n_chunks == n_stft_pad.

    n_chunks == 1: constants resident, single-buffered.
    n_chunks  > 1: constants streamed per 128*k-lane chunk (double-buffered).
    """
    f128 = max(1, n_stft_pad // 128)
    chunk_opts = [d for d in range(1, f128 + 1) if f128 % d == 0]

    def usage(tm, cn, nbuf):
        const = nbuf * (2 * K * cn + cn * n_mels_pad) * itemsize   # Wre, Wim, fbank
        tiles = 2 * (tm * K * itemsize + tm * n_mels_pad * 4)      # dbl-buf in/out
        work = 4 * tm * cn * 4                                     # re/im/mag/partial
        return const + tiles + work

    if rows >= 2 * tm_max:
        tm = tm_max
    else:
        # keep >= 2 row-tile grid steps when possible (megacore / 2-TC chips)
        tm = min(tm_max, max(8, _round_up((rows + 1) // 2, 8)))

    while True:
        for n_chunks in chunk_opts:
            cn = n_stft_pad // n_chunks
            nbuf = 1 if n_chunks == 1 else 2
            if usage(tm, cn, nbuf) <= budget:
                return tm, cn, n_chunks
        if tm <= 8:
            break
        tm = max(8, _round_up(tm // 2, 8))
    # Nothing fits the estimate: smallest configuration, rely on raised limit.
    return 8, n_stft_pad // f128, f128


def _const_spec(shape, index_map, single_buffer):
    """BlockSpec for the DFT/fbank constants. Resident constants are
    single-buffered (halves their VMEM footprint); streamed chunks keep the
    default double buffering to overlap the chunk DMA with compute."""
    if single_buffer and hasattr(pl, "Buffered"):
        try:
            return pl.BlockSpec(shape, index_map, pipeline_mode=pl.Buffered(1))
        except TypeError:  # older BlockSpec without pipeline_mode
            pass
    return pl.BlockSpec(shape, index_map)


# ----------------------------------------------------------------------------
# Pallas kernel
# ----------------------------------------------------------------------------
def _mel_kernel(power, frames_ref, wr_ref, wi_ref, fb_ref, out_ref):
    # frames_ref: (TM, K)   wr/wi_ref: (K, CN)   fb_ref: (CN, n_mels_pad)
    # out_ref:    (TM, n_mels_pad), resident across the chunk grid axis.
    c = pl.program_id(1)
    f = frames_ref[...]
    re = jnp.dot(f, wr_ref[...], preferred_element_type=jnp.float32)
    im = jnp.dot(f, wi_ref[...], preferred_element_type=jnp.float32)
    sq = re * re + im * im
    if power == 2.0:
        mag = sq
    elif power == 1.0:
        mag = jnp.sqrt(sq)
    else:
        mag = sq ** (0.5 * power)
    partial = jnp.dot(mag.astype(fb_ref.dtype), fb_ref[...],
                      preferred_element_type=jnp.float32)

    @pl.when(c == 0)
    def _():
        out_ref[...] = partial

    @pl.when(c != 0)
    def _():
        out_ref[...] = out_ref[...] + partial


# ----------------------------------------------------------------------------
# Forward wrapper (semantics of MelSpectrogramONNXWrapper.forward)
# ----------------------------------------------------------------------------
def mel_spectrogram_forward(wav_with_channel, mel_params, buffers):
    """wav_with_channel: (B, 1, T_audio) float32 -> (B, n_mels, num_frames)."""
    if wav_with_channel.ndim != 3 or wav_with_channel.shape[1] != 1:
        raise ValueError(f"Expected (B, 1, T_audio), got {wav_with_channel.shape}")

    n_fft = mel_params["n_fft"]
    hop = mel_params.get("hop_length", n_fft // 4)
    win_length = mel_params.get("win_length", n_fft)
    center = mel_params.get("center", True)
    pad_mode = mel_params.get("pad_mode", "reflect")
    power = float(mel_params.get("power", 1.0))

    w_real = buffers["w_real"]
    w_imag = buffers["w_imag"]
    fbank_pad = buffers["fbank_pad"]
    n_stft_pad = buffers["n_stft_pad"]
    n_mels = buffers["n_mels"]
    n_mels_pad = buffers["n_mels_pad"]
    K = buffers["frame_len"]
    cdt = buffers["compute_dtype"]

    wav = wav_with_channel[:, 0, :]                 # (B, T)
    B, T = wav.shape

    if center:
        pad = n_fft // 2
        if pad_mode == "reflect" and T <= pad:
            raise ValueError(
                f"reflect padding requires T_audio > n_fft//2 ({pad}), got {T}")
        wav = jnp.pad(wav, ((0, 0), (pad, pad)), mode=pad_mode)
    padded_T = wav.shape[1]

    num_frames = (padded_T - win_length) // hop + 1
    if num_frames <= 0:
        return jnp.zeros((B, n_mels, 0), dtype=wav_with_channel.dtype)

    # --- Frame extraction (plain-JAX glue) -----------------------------------
    if K % hop == 0:
        # slice + concat (no gather): frames[:, :, c*hop:(c+1)*hop] = chunk[i+c]
        m = K // hop
        chunks = wav[:, :(num_frames + m - 1) * hop].reshape(
            B, num_frames + m - 1, hop)
        frames = jnp.concatenate(
            [chunks[:, c:c + num_frames, :] for c in range(m)], axis=2)  # (B,F,K)
    else:
        # TODO(synk): replace the gather fallback with slice/concat framing;
        # large gathers lower poorly on TPU.
        idx = (jnp.arange(num_frames) * hop)[:, None] + jnp.arange(K)[None, :]
        frames = wav[:, idx]                                             # (B,F,K)
    # TODO(synk): frame inside the kernel (memory_space=pl.ANY + make_async_copy
    # of the contiguous per-tile audio slab) so the audio is read once from HBM
    # instead of materializing the ~K/hop-times-larger frames intermediate.

    rows = B * num_frames
    frames2d = frames.reshape(rows, K).astype(cdt)

    # --- Tiling / chunking selection ------------------------------------------
    cfg = _device_config()
    TM, CN, n_chunks = _choose_tiling(rows, K, n_stft_pad, n_mels_pad,
                                      cdt.itemsize, cfg["tm_max"],
                                      cfg["vmem_budget"])

    rows_padded = _round_up(rows, TM)
    if rows_padded != rows:
        frames2d = jnp.pad(frames2d, ((0, rows_padded - rows), (0, 0)))

    grid = (rows_padded // TM, n_chunks)
    resident = (n_chunks == 1)
    in_specs = [
        pl.BlockSpec((TM, K), lambda i, c: (i, 0)),                    # frames tile
        _const_spec((K, CN), lambda i, c: (0, c), resident),           # Re DFT
        _const_spec((K, CN), lambda i, c: (0, c), resident),           # Im DFT
        _const_spec((CN, n_mels_pad), lambda i, c: (c, 0), resident),  # mel fbank
    ]

    out = pl.pallas_call(
        functools.partial(_mel_kernel, power),
        out_shape=jax.ShapeDtypeStruct((rows_padded, n_mels_pad), jnp.float32),
        grid=grid,
        in_specs=in_specs,
        out_specs=pl.BlockSpec((TM, n_mels_pad), lambda i, c: (i, 0)),
        compiler_params=pltpu.CompilerParams(
            dimension_semantics=("parallel", "arbitrary"),
            vmem_limit_bytes=cfg["vmem_limit"]),
    )(frames2d, w_real, w_imag, fbank_pad)

    out = out[:rows, :n_mels].reshape(B, num_frames, n_mels)
    return jnp.transpose(out, (0, 2, 1)).astype(wav_with_channel.dtype)


# ----------------------------------------------------------------------------
# Pure-JAX reference (mirrors the torch module step by step)
# ----------------------------------------------------------------------------
def mel_spectrogram_ref(wav_with_channel, mel_params, buffers):
    n_fft = mel_params["n_fft"]
    hop = mel_params.get("hop_length", n_fft // 4)
    win_length = mel_params.get("win_length", n_fft)
    center = mel_params.get("center", True)
    pad_mode = mel_params.get("pad_mode", "reflect")
    power = float(mel_params.get("power", 1.0))
    hp = jax.lax.Precision.HIGHEST

    wav = wav_with_channel[:, 0, :]
    if center:
        wav = jnp.pad(wav, ((0, 0), (n_fft // 2, n_fft // 2)), mode=pad_mode)
    padded_T = wav.shape[1]
    F = (padded_T - win_length) // hop + 1
    starts = jnp.arange(F) * hop
    idx = starts[:, None] + jnp.arange(win_length)[None, :]
    frames = wav[:, idx] * buffers["window"]
    if n_fft > win_length:
        frames = jnp.pad(frames, ((0, 0), (0, 0), (0, n_fft - win_length)))
    elif n_fft < win_length:
        frames = frames[:, :, :n_fft]
    re = jnp.matmul(frames, buffers["rfft_mat_real_t"], precision=hp)
    im = jnp.matmul(frames, buffers["rfft_mat_imag_t"], precision=hp)
    mag = jnp.sqrt(re * re + im * im)
    if power != 1.0:
        mag = mag ** power
    mel = jnp.matmul(mag, buffers["mel_fbanks"], precision=hp)
    return jnp.transpose(mel, (0, 2, 1))


# ----------------------------------------------------------------------------
if __name__ == "__main__":
    mel_params = dict(
        n_fft=128,
        hop_length=32,
        win_length=128,
        sample_rate=16000,
        window_fn="hann_window",
        center=True,
        pad_mode="reflect",
        power=1.0,
        mel_fmin=0.0,
        mel_fmax=None,
        num_mels=16,
        norm="slaney",
        mel_scale="slaney",
    )
    buffers = make_buffers(mel_params)

    key = jax.random.PRNGKey(0)
    B, T_audio = 2, 256
    wav = jax.random.normal(key, (B, 1, T_audio), dtype=jnp.float32)

    out = jax.block_until_ready(mel_spectrogram_forward(wav, mel_params, buffers))
    ref = jax.block_until_ready(mel_spectrogram_ref(wav, mel_params, buffers))

    assert out.shape == ref.shape, (out.shape, ref.shape)
    np_out = np.asarray(out)
    np_ref = np.asarray(ref)
    max_err = float(np.max(np.abs(np_out - np_ref)))
    assert np.allclose(np_out, np_ref, rtol=2e-3, atol=2e-3), max_err

    print("KERNEL_OK")
</pallas_src>

<mosaic_0001>
module attributes {stable_mosaic.version = 11 : i64} {
  func.func @_mel_kernel(%arg0: i32, %arg1: i32, %arg2: memref<16x128xf32, #tpu.memory_space<vmem>>, %arg3: memref<128x128xf32, #tpu.memory_space<vmem>>, %arg4: memref<128x128xf32, #tpu.memory_space<vmem>>, %arg5: memref<128x128xf32, #tpu.memory_space<vmem>>, %arg6: memref<16x128xf32, #tpu.memory_space<vmem>>) attributes {dimension_semantics = [#tpu.dimension_semantics<parallel>, #tpu.dimension_semantics<arbitrary>], iteration_bounds = array<i64: 2, 1>, scalar_prefetch = 0 : i64, scratch_operands = 0 : i64, tpu.core_type = #tpu.core_type<tc>, window_params = [{transform_indices = @transform_0, window_bounds = array<i64: 16, 128>}, {pipeline_mode = #tpu.pipeline_mode<synchronous>, transform_indices = @transform_1, window_bounds = array<i64: 128, 128>}, {pipeline_mode = #tpu.pipeline_mode<synchronous>, transform_indices = @transform_2, window_bounds = array<i64: 128, 128>}, {pipeline_mode = #tpu.pipeline_mode<synchronous>, transform_indices = @transform_3, window_bounds = array<i64: 128, 128>}, {transform_indices = @transform_4, window_bounds = array<i64: 16, 128>}]} {
    %c0 = arith.constant 0 : index
    %c0_0 = arith.constant 0 : index
    %0 = vector.load %arg2[%c0, %c0_0] : memref<16x128xf32, #tpu.memory_space<vmem>>, vector<16x128xf32>
    %c0_1 = arith.constant 0 : index
    %c0_2 = arith.constant 0 : index
    %1 = vector.load %arg3[%c0_1, %c0_2] : memref<128x128xf32, #tpu.memory_space<vmem>>, vector<128x128xf32>
    %cst = arith.constant dense<0.000000e+00> : vector<16x128xf32>
    %2 = tpu.matmul %0, %1, %cst {dimension_numbers = #tpu.dot_dimension_numbers<[1], [0], [0], [1], [0, 0, 1, 1], [], []>} : vector<16x128xf32>, vector<128x128xf32>, vector<16x128xf32> -> vector<16x128xf32>
    %c0_3 = arith.constant 0 : index
    %c0_4 = arith.constant 0 : index
    %3 = vector.load %arg4[%c0_3, %c0_4] : memref<128x128xf32, #tpu.memory_space<vmem>>, vector<128x128xf32>
    %cst_5 = arith.constant dense<0.000000e+00> : vector<16x128xf32>
    %4 = tpu.matmul %0, %3, %cst_5 {dimension_numbers = #tpu.dot_dimension_numbers<[1], [0], [0], [1], [0, 0, 1, 1], [], []>} : vector<16x128xf32>, vector<128x128xf32>, vector<16x128xf32> -> vector<16x128xf32>
    %5 = arith.mulf %2, %2 : vector<16x128xf32>
    %6 = arith.mulf %4, %4 : vector<16x128xf32>
    %7 = arith.addf %5, %6 : vector<16x128xf32>
    %8 = math.sqrt %7 : vector<16x128xf32>
    %c0_6 = arith.constant 0 : index
    %c0_7 = arith.constant 0 : index
    %9 = vector.load %arg5[%c0_6, %c0_7] : memref<128x128xf32, #tpu.memory_space<vmem>>, vector<128x128xf32>
    %cst_8 = arith.constant dense<0.000000e+00> : vector<16x128xf32>
    %10 = tpu.matmul %8, %9, %cst_8 {dimension_numbers = #tpu.dot_dimension_numbers<[1], [0], [0], [1], [0, 0, 1, 1], [], []>} : vector<16x128xf32>, vector<128x128xf32>, vector<16x128xf32> -> vector<16x128xf32>
    %c0_i32 = arith.constant 0 : i32
    %11 = arith.cmpi eq, %arg1, %c0_i32 : i32
    %12 = arith.extui %11 : i1 to i32
    %c0_i32_9 = arith.constant 0 : i32
    %13 = arith.cmpi ne, %12, %c0_i32_9 : i32
    scf.if %13 {
      %c0_12 = arith.constant 0 : index
      %c0_13 = arith.constant 0 : index
      %17 = vector.load %arg6[%c0_12, %c0_13] : memref<16x128xf32, #tpu.memory_space<vmem>>, vector<16x128xf32>
      tpu.vector_store %arg6[%c0_12, %c0_13], %10 {strides = array<i32>} : memref<16x128xf32, #tpu.memory_space<vmem>>, vector<16x128xf32>,
    } else {
    }
    %c0_i32_10 = arith.constant 0 : i32
    %14 = arith.cmpi ne, %arg1, %c0_i32_10 : i32
    %15 = arith.extui %14 : i1 to i32
    %c0_i32_11 = arith.constant 0 : i32
    %16 = arith.cmpi ne, %15, %c0_i32_11 : i32
    scf.if %16 {
      %c0_12 = arith.constant 0 : index
      %c0_13 = arith.constant 0 : index
      %17 = vector.load %arg6[%c0_12, %c0_13] : memref<16x128xf32, #tpu.memory_space<vmem>>, vector<16x128xf32>
      %18 = arith.addf %17, %10 : vector<16x128xf32>
      %c0_14 = arith.constant 0 : index
      %c0_15 = arith.constant 0 : index
      %19 = vector.load %arg6[%c0_14, %c0_15] : memref<16x128xf32, #tpu.memory_space<vmem>>, vector<16x128xf32>
      tpu.vector_store %arg6[%c0_14, %c0_15], %18 {strides = array<i32>} : memref<16x128xf32, #tpu.memory_space<vmem>>, vector<16x128xf32>,
    } else {
    }
    return
  }
  func.func @transform_0(%arg0: i32, %arg1: i32) -> (i32, i32) {
    %c0_i32 = arith.constant 0 : i32
    %c0_i32_0 = arith.constant 0 : i32
    return %arg0, %c0_i32 : i32, i32
  }
  func.func @transform_1(%arg0: i32, %arg1: i32) -> (i32, i32) {
    %c0_i32 = arith.constant 0 : i32
    %c0_i32_0 = arith.constant 0 : i32
    return %c0_i32, %arg1 : i32, i32
  }
  func.func @transform_2(%arg0: i32, %arg1: i32) -> (i32, i32) {
    %c0_i32 = arith.constant 0 : i32
    %c0_i32_0 = arith.constant 0 : i32
    return %c0_i32, %arg1 : i32, i32
  }
  func.func @transform_3(%arg0: i32, %arg1: i32) -> (i32, i32) {
    %c0_i32 = arith.constant 0 : i32
    %c0_i32_0 = arith.constant 0 : i32
    return %arg1, %c0_i32 : i32, i32
  }
  func.func @transform_4(%arg0: i32, %arg1: i32) -> (i32, i32) {
    %c0_i32 = arith.constant 0 : i32
    %c0_i32_0 = arith.constant 0 : i32
    return %arg0, %c0_i32 : i32, i32
  }
}

</mosaic_0001>

<bundles_post_ra>
// kernel: tpu_custom_call.1
= control target key start
LH: loop header
LB: loop body
LE: loop exit
PB: predicated region body
PF: predicated region fallthrough
CT: control target
= control target key end

     0   :  { %9 = vsyncpa [#allocation3], 0  ;;  %s1657_s0 = inlined_call_operand.hbm [shape: f32[32,128], index: 0, kind: input, shape index: {}]   ;;  %s1658_s1 = inlined_call_operand.hbm [shape: f32[128,128], index: 1, kind: input, shape index: {}]   ;;  %s1659_s2 = inlined_call_operand.hbm [shape: f32[128,128], index: 2, kind: input, shape index: {}]   ;;  %s1660_s3 = inlined_call_operand.hbm [shape: f32[128,128], index: 3, kind: input, shape index: {}]   ;;  %s1661_s4 = inlined_call_operand.hbm [shape: f32[32,128], index: 4, kind: output, shape index: {}]  }
   0x1   :  { %11 = vsyncpa [#allocation3 + $0x1], 0 }
   0x2   :  { %12 = vsyncpa [#allocation6], 0 }
   0x3   :  { %13 = vsyncpa [#allocation9], 0 }
   0x4   :  { %14 = vsyncpa [#allocation4], 0 }
   0x5   :  { %16 = vsyncpa [#allocation4 + $0x1], 0  ;;  %s1357_s15 = smov 0   ;;  %s1359_s16 = smov 0  }
   0x6   :  { %s1361_s17 = smov 0   ;;  %s1363_s18 = smov 0  }
   0x7   :  { %s1365_s19 = smov 0   ;;  %s1367_s20 = smov 0  }
   0x8 LB: > { %s738_s21 = sadd.s32 4294967295, %s1321_s20   ;;  %s739_s22 = sadd.s32 4294967294, %s1321_s20   ;;  %s1321_s20 = sphi %s1367_s20, %s22_s20   ;;  %s1317_s19 = sphi %s1365_s19, %s1688_s19   ;;  %s1313_s18 = sphi %s1363_s18, %s1687_s18   ;;  %s1309_s17 = sphi %s1361_s17, %s1686_s17   ;;  %s1305_s16 = sphi %s1359_s16, %s1685_s16   ;;  %s1301_s15 = sphi %s1357_s15, %s1684_s15  }
   0x9   : > { %p54_p0 = scmp.ne.s32.totalorder %s1305_s16, %s1301_s15  ;;  %p1391_p1 = scmp.eq.s32.totalorder %s738_s21, 0 }
   0xa   : > { %p1395_p2 = scmp.eq.s32.totalorder %s738_s21, 1  ;;  %p162_p3 = scmp.eq.s32.totalorder %s739_s22, 1 }
   0xb   : > { %s1667_s23 = scalar_select %p1391_p1, 1, 0 }
   0xc   : > { %s1668_s24 = scalar_select %p1395_p2, 1, 0 }
   0xd   : > { %p1401_p4 = por %p1391_p1, %p54_p0  ;;  %p740_p5 = scmp.ge.s32.totalorder %s1321_s20, 1 }
   0xe   : > { %p1406_p6 = por %p162_p3, %p54_p0  ;;  %p169_p7 = scmp.lt.s32.totalorder %s1321_s20, 3 }
   0xf   : > { %s1669_s25 = scalar_select %p1401_p4, 1, 0 }
  0x10   : > { %s1670_s26 = scalar_select %p1406_p6, 1, 0 }
  0x11   : > { %p1411_p8 = pnand %p740_p5, %p169_p7  ;;  %s1323_s28 = smov [#allocation5]  }
  0x12   : > { %1671 = sst [smem:[#allocation15_spill]] %s1670_s26  ;;  %s183_s29 = sshll.u32 %s1323_s28, 4  ;;  %s1415_s29 = int_to_ptr.vmem [resolvable:$true] %s183_s29 }
  0x13   : > { %s1672_s27 = scalar_select %p1411_p8, 1, 0 }
  0x14   : > { %p1032_p9 = pneg %p1411_p8  ;;  %s1324_s5 = smov [#allocation7]  }
  0x15   : > { %s198_s6 = sshll.u32 %s1324_s5, 4  ;;  %s1325_s7 = smov [#allocation8]   ;;  %s1426_s6 = int_to_ptr.vmem [resolvable:$true] %s198_s6 }
  0x16   : > { %p1422_p11 = pnand %p1032_p9, %p1391_p1  ;;  %s1428_s8 = sshll.u32 %s1325_s7, 4  ;;  %s215_s8 = int_to_ptr.vmem [resolvable:$true] %s1428_s8 }
  0x17   : > { %s1117_s11 = scalar_lea.hbm %s1658_s1, 2048 }
  0x18   : > { %p1118_p12 = scmp.ne.s32.totalorder %s1658_s1, %s1117_s11  ;;  %p1438_p13 = pneg %p1422_p11 }
  0x19   : > { %p1124_p5 = scmp.lt.u32.totalorder %s1117_s11, %s1658_s1 }
  0x1a   : > { %p1120_p0 = pnand %p1438_p13, %p1118_p12 }
  0x1c   : > { %p1121_p3 = pneg %p1120_p0 }
  0x1e   : > { %p1126_p7 = pnand %p1124_p5, %p1121_p3 }
  0x20   : > { %1129 = shalt.err (!%p1126_p7)
}
  0x21   : > { %s1130_s28 = scalar_lea.vmem %s1415_s29, 2048  ;;  %p1138_p1 = scmp.lt.s32.totalorder %s1415_s29, %s1415_s29 }
  0x22   : > { %p1131_p9 = scmp.ne.s32.totalorder %s1415_s29, %s1130_s28  ;;  %p1139_p4 = scmp.lt.s32.totalorder %s1130_s28, %s1130_s28 }
  0x24   : > { %p1133_p10 = pnand %p1131_p9, %p1438_p13  ;;  %p1140_p12 = por %p1139_p4, %p1138_p1 }
  0x26   : > { %p1134_p6 = pneg %p1133_p10 }
  0x28   : > { %p1141_p0 = pnand %p1140_p12, %p1134_p6 }
  0x2a   : > { %1144 = shalt.err (!%p1141_p0)
}
  0x2b   : > { %s1326_s5 = smov 128   ;;  %s1327_s7 = smov 8  }
  0x2c   : > { %1035 = dma.hbm_to_vmem [thread:$0]  (!%p1422_p11), %s1658_s1, 2048, %s1415_s29, [#allocation6], %s1326_s5, %s1326_s5, %s1327_s7  }
  0x2d   : > { %s1145_s13 = scalar_lea.hbm %s1659_s2, 2048 }
  0x2e   : > { %p1146_p1 = scmp.ne.s32.totalorder %s1659_s2, %s1145_s13  ;;  %p1152_p10 = scmp.lt.u32.totalorder %s1145_s13, %s1659_s2 }
  0x30   : > { %p1148_p4 = pnand %p1146_p1, %p1438_p13 }
  0x32   : > { %p1149_p6 = pneg %p1148_p4 }
  0x34   : > { %p1154_p3 = pnand %p1152_p10, %p1149_p6 }
  0x36   : > { %1157 = shalt.err (!%p1154_p3)
}
  0x37   : > { %s1158_s29 = scalar_lea.vmem %s1426_s6, 2048  ;;  %p1166_p12 = scmp.lt.s32.totalorder %s1426_s6, %s1426_s6 }
  0x38   : > { %p1159_p5 = scmp.ne.s32.totalorder %s1426_s6, %s1158_s29  ;;  %p1167_p0 = scmp.lt.s32.totalorder %s1158_s29, %s1158_s29 }
  0x3a   : > { %p1161_p7 = pnand %p1159_p5, %p1438_p13  ;;  %p1168_p1 = por %p1167_p0, %p1166_p12 }
  0x3c   : > { %p1162_p9 = pneg %p1161_p7 }
  0x3e   : > { %p1169_p4 = pnand %p1168_p1, %p1162_p9 }
  0x40   : > { %1172 = shalt.err (!%p1169_p4)
}
  0x41   : > { %1038 = dma.hbm_to_vmem [thread:$0]  (!%p1422_p11), %s1659_s2, 2048, %s1426_s6, [#allocation6], %s1326_s5, %s1326_s5, %s1327_s7  }
  0x42   : > { %s1173_s12 = scalar_lea.hbm %s1660_s3, 2048 }
  0x43   : > { %p1174_p6 = scmp.ne.s32.totalorder %s1660_s3, %s1173_s12  ;;  %p1180_p5 = scmp.lt.u32.totalorder %s1173_s12, %s1660_s3 }
  0x45   : > { %p1176_p10 = pnand %p1174_p6, %p1438_p13 }
  0x47   : > { %p1177_p3 = pneg %p1176_p10 }
  0x49   : > { %p1182_p7 = pnand %p1180_p5, %p1177_p3 }
  0x4b   : > { %1185 = shalt.err (!%p1182_p7)
}
  0x4c   : > { %s1186_s29 = scalar_lea.vmem %s215_s8, 2048  ;;  %p1194_p1 = scmp.lt.s32.totalorder %s215_s8, %s215_s8 }
  0x4d   : > { %p1187_p9 = scmp.ne.s32.totalorder %s215_s8, %s1186_s29  ;;  %p1195_p4 = scmp.lt.s32.totalorder %s1186_s29, %s1186_s29 }
  0x4f   : > { %p1189_p12 = pnand %p1187_p9, %p1438_p13  ;;  %p1196_p8 = por %p1195_p4, %p1194_p1 }
  0x51   : > { %p1190_p0 = pneg %p1189_p12 }
  0x53   : > { %p1197_p2 = pnand %p1196_p8, %p1190_p0 }
  0x55   : > { %1200 = shalt.err (!%p1197_p2)
}
  0x56   : > { %1041 = dma.hbm_to_vmem [thread:$0]  (!%p1422_p11), %s1660_s3, 2048, %s215_s8, [#allocation9], %s1326_s5, %s1326_s5, %s1327_s7  }
  0x57   : > { %s41_s14 = sadd.s32 1, %s1309_s17  ;;  %s34_s30 = sadd.s32 1, %s1317_s19 }
  0x58   : > { %p48_p2 = scmp.ne.s32.totalorder %s1309_s17, %s1305_s16  ;;  %p36_p8 = scmp.ge.s32.totalorder %s34_s30, 2 }
  0x59   : > { %p49_p13 = scmp.eq.s32.totalorder %s1321_s20, 0  ;;  %p1675_p6 = scmp.ne.s32.totalorder %s1668_s24, 0 }
  0x5a   : > { %p1053_p3 = scmp.lt.s32.totalorder %s1321_s20, 2  ;;  %s1690_s30 = smov (%p36_p8, %s34_s30), 0 }
  0x5b   : > { %p1517_p10 = por %p1675_p6, %p48_p2  ;;  %p50_p5 = por %p49_p13, %p48_p2 }
  0x5c   : > { %s228_s10 = sand.u32 1, %s1309_s17   ;;  %s38_s11 = ssub.s32 %s1317_s19, %s1690_s30 }
  0x5d   : > { %p39_p7 = scmp.eq.s32.totalorder %s38_s11, 0  ;;  %s745_s8 = sshll.u32 %s228_s10, 4 }
  0x5e   : > { %s759_s12 = sshll.u32 %s1317_s19, 8  ;;  %s232_s28 = scalar_lea.vmem [#allocation2], %s745_s8 }
  0x5f   : > { %s1529_s13 = scalar_select %p39_p7, %s1309_s17, %s41_s14  }
  0x60   : > { %s1534_s24 = scalar_lea.hbm %s1657_s0, %s759_s12  ;;  %s239_s29 = sshll.u32 %s232_s28, 4  ;;  %s1536_s29 = int_to_ptr.vmem [resolvable:$true] %s239_s29 }
  0x61   : > { %p1540_p11 = pnand %p1053_p3, %p50_p5  ;;  %s1544_s26 = scalar_lea.sflag [#allocation3], %s228_s10 }
  0x62   : > { %s1201_s14 = scalar_lea.hbm %s1534_s24, 256  ;;  %s1206_s12 = scalar_lea.hbm %s1657_s0, 512 }
  0x63   : > { %p1202_p9 = scmp.ne.s32.totalorder %s1534_s24, %s1201_s14  ;;  %p1203_p12 = pneg %p1540_p11 }
  0x64   : > { %p1207_p4 = scmp.lt.u32.totalorder %s1534_s24, %s1657_s0  ;;  %p1208_p2 = scmp.lt.u32.totalorder %s1206_s12, %s1201_s14 }
  0x65   : > { %p1204_p0 = pnand %p1203_p12, %p1202_p9  ;;  %p1210_p13 = scmp.lt.u32.totalorder %s1201_s14, %s1534_s24 }
  0x66   : > { %p1209_p8 = por %p1208_p2, %p1207_p4 }
  0x67   : > { %p1205_p1 = pneg %p1204_p0 }
  0x68   : > { %p1211_p6 = por %p1210_p13, %p1209_p8 }
  0x6a   : > { %p1212_p3 = pnand %p1211_p6, %p1205_p1 }
  0x6c   : > { %1215 = shalt.err (!%p1212_p3)
}
  0x6d   : > { %s1216_s10 = scalar_lea.vmem %s1536_s29, 256  ;;  %s1328_s28 = smov [#allocation2]  }
  0x6e   : > { %p1217_p5 = scmp.ne.s32.totalorder %s1536_s29, %s1216_s10  ;;  %s1221_s11 = sshll.u32 %s1328_s28, 4  ;;  %s1222_s11 = int_to_ptr.vmem [resolvable:$false] %s1221_s11 }
  0x6f   : > { %s1223_s8 = scalar_lea.vmem %s1222_s11, 512  ;;  %p1224_p0 = scmp.lt.s32.totalorder %s1536_s29, %s1222_s11 }
  0x70   : > { %p1219_p7 = pnand %p1217_p5, %p1203_p12  ;;  %p1225_p4 = scmp.lt.s32.totalorder %s1223_s8, %s1216_s10 }
  0x72   : > { %p1220_p9 = pneg %p1219_p7  ;;  %p1226_p2 = por %p1225_p4, %p1224_p0 }
  0x74   : > { %p1227_p8 = pnand %p1226_p2, %p1220_p9 }
  0x76   : > { %1230 = shalt.err (!%p1227_p8)
}
  0x77   : > { %1045 = dma.hbm_to_vmem [thread:$0]  (!%p1540_p11), %s1534_s24, 256, %s1536_s29, %s1544_s26, %s1326_s5, %s1326_s5, %s1327_s7  }
  0x78   : > { %p1678_p12 = scmp.ne.s32.totalorder %s1672_s27, 0 }
  0x79   : > { %s1578_s14 = sand.u32 (!%p1678_p12), 1, %s1305_s16   ;;  %p1679_p1 = scmp.ne.s32.totalorder (!%p1678_p12), %s1669_s25, 0 }
  0x7a   : > { %251 = sbr.rel (%p1678_p12) target bundleno = 632 (0x278), region = 36  ;;  %s749_s12 = sshll.u32 (!%p1678_p12), %s1578_s14, 4 }
  0x7b   : > { %s254_s21 = scalar_lea.sflag (!%p1678_p12), [#allocation3], %s1578_s14  ;;  %s1584_s6 = scalar_lea.vmem (!%p1678_p12), [#allocation2], %s749_s12 }
  0x81   : > { %1284 = dma.done.wait (%p1679_p1), %s254_s21, 256  }
  0x82   : > { %1286 = vsyncadd (%p1679_p1), %s254_s21, 4294967040  ;;  %p1680_p11 = scmp.ne.s32.totalorder %s1667_s23, 0 }
  0x84   : > { %1288 = dma.done.wait (%p1680_p11), [#allocation6], 4096  }
  0x85   : > { %1290 = vsyncadd (%p1680_p11), [#allocation6], 4294963200 }
  0x86   : > { %1292 = dma.done.wait (%p1680_p11), [#allocation9], 2048  }
  0x87   : > { %1294 = vsyncadd (%p1680_p11), [#allocation9], 4294965248  ;;  %v299_v0 = vld [vmem:[#allocation5] sm:$0xff]  ;;  %v300_v1 = vld [vmem:[#allocation5 + $0x8] sm:$0xff]  ;;  %s293_s23 = scalar_lea.vmem [#allocation10], %s749_s12  ;;  %s760_s27 = sshll.u32 %s1313_s18, 8 }
  0x88   : > { %v390_v2 = vld [vmem:[#allocation7] sm:$0xff]  ;;  %v920_v3 = vpack.c.bf16 %v300_v1, %v299_v0  ;;  %v391_v4 = vld [vmem:[#allocation7 + $0x8] sm:$0xff]  ;;  %v301_v5 = vld [vmem:[#allocation5 + $0x10] sm:$0xff]  ;;  %s622_s25 = sshll.u32 %s293_s23, 4  ;;  %s1608_s24 = scalar_lea.hbm %s1661_s4, %s760_s27  ;;  %s1603_s25 = int_to_ptr.vmem [resolvable:$true] %s622_s25 }
  0x89   : > { %v302_v6 = vld [vmem:[#allocation5 + $0x18] sm:$0xff]  ;;  %v952_v7 = vpack.c.bf16 %v391_v4, %v390_v2  ;;  %v392_v9 = vld [vmem:[#allocation7 + $0x10] sm:$0xff]  ;;  %v303_v11 = vld [vmem:[#allocation5 + $0x20] sm:$0xff]  ;;  %s609_s29 = scalar_lea.sflag [#allocation4], %s1578_s14  ;;  %s1231_s26 = scalar_lea.vmem %s1603_s25, 256 }
  0x8a   : > { %v924_v8 = vpack.c.bf16 %v302_v6, %v301_v5  ;;  %v393_v10 = vld [vmem:[#allocation7 + $0x18] sm:$0xff]  ;;  %921 = vmatprep.subr.bf16.mxu0 %v920_v3  ;;  %v304_v13 = vld [vmem:[#allocation5 + $0x28] sm:$0xff]  ;;  %v394_v14 = vld [vmem:[#allocation7 + $0x20] sm:$0xff]  ;;  %p1232_p13 = scmp.ne.s32.totalorder %s1603_s25, %s1231_s26  ;;  %s1329_s18 = smov [#allocation10]  }
  0x8b   : > { %v956_v12 = vpack.c.bf16 %v393_v10, %v392_v9  ;;  %v395_v15 = vld [vmem:[#allocation7 + $0x28] sm:$0xff]  ;;  %953 = vmatprep.subr.bf16.mxu1 %v952_v7  ;;  %923 = vmatpush3.bf16.msra.mxu0 %v920_v3  ;;  %v928_v16 = vpack.c.bf16 %v304_v13, %v303_v11  ;;  %v305_v18 = vld [vmem:[#allocation5 + $0x30] sm:$0xff]  ;;  %v306_v19 = vld [vmem:[#allocation5 + $0x38] sm:$0xff]  ;;  %s1235_s22 = sshll.u32 %s1329_s18, 4  ;;  %s1236_s22 = int_to_ptr.vmem [resolvable:$false] %s1235_s22 }
  0x8c   : > { %955 = vmatpush3.bf16.msra.mxu1 %v952_v7  ;;  %925 = vmatprep.subr.bf16.mxu0 %v924_v8  ;;  %v960_v17 = vpack.c.bf16 %v395_v15, %v394_v14  ;;  %v396_v20 = vld [vmem:[#allocation7 + $0x30] sm:$0xff]  ;;  %v397_v21 = vld [vmem:[#allocation7 + $0x38] sm:$0xff]  ;;  %v932_v22 = vpack.c.bf16 %v306_v19, %v305_v18  ;;  %v307_v24 = vld [vmem:[#allocation5 + $0x40] sm:$0xff]  ;;  %p1233_p6 = pnand %p1232_p13, %p1517_p10  ;;  %s1237_s10 = scalar_lea.vmem %s1236_s22, 512 }
  0x8d   : > { %957 = vmatprep.subr.bf16.mxu1 %v956_v12  ;;  %v964_v23 = vpack.c.bf16 %v397_v21, %v396_v20  ;;  %v308_v25 = vld [vmem:[#allocation5 + $0x48] sm:$0xff]  ;;  %v297_v26 = vld [vmem:[%s1584_s6] sm:$0xff]  ;;  %v310_v32 = vld [vmem:[#allocation5 + $0x58] sm:$0xff]  ;;  %p1238_p5 = scmp.lt.s32.totalorder %s1603_s25, %s1236_s22  ;;  %p1239_p7 = scmp.lt.s32.totalorder %s1237_s10, %s1231_s26 }
  0x8e   : > { %v398_v27 = vld [vmem:[#allocation7 + $0x40] sm:$0xff]  ;;  %v399_v28 = vld [vmem:[#allocation7 + $0x48] sm:$0xff]  ;;  %847 = vmatprep.mubr.f32.mxu0 %v297_v26  ;;  %882 = vmatprep.mubr.f32.mxu1 %v297_v26  ;;  %v936_v29 = vpack.c.bf16 %v308_v25, %v307_v24  ;;  %v309_v31 = vld [vmem:[#allocation5 + $0x50] sm:$0xff]  ;;  %p1234_p3 = pneg %p1233_p6 }
  0x8f   : > { %927 = vmatpush3.bf16.msra.mxu0 %v924_v8  ;;  %v968_v30 = vpack.c.bf16 %v399_v28, %v398_v27  ;;  %v400_v33 = vld [vmem:[#allocation7 + $0x50] sm:$0xff]  ;;  %v401_v34 = vld [vmem:[#allocation7 + $0x58] sm:$0xff]  ;;  %v940_v35 = vpack.c.bf16 %v310_v32, %v309_v31  ;;  %v311_v37 = vld [vmem:[#allocation5 + $0x60] sm:$0xff]  ;;  %p1240_p9 = por %p1239_p7, %p1238_p5 }
  0x90   : > { %959 = vmatpush3.bf16.msra.mxu1 %v956_v12  ;;  %929 = vmatprep.subr.bf16.mxu0 %v928_v16  ;;  %v972_v36 = vpack.c.bf16 %v401_v34, %v400_v33  ;;  %v312_v38 = vld [vmem:[#allocation5 + $0x68] sm:$0xff]  ;;  %v402_v39 = vld [vmem:[#allocation7 + $0x60] sm:$0xff]  ;;  %v313_v43 = vld [vmem:[#allocation5 + $0x70] sm:$0xff] }
  0x91   : > { %961 = vmatprep.subr.bf16.mxu1 %v960_v17  ;;  %v403_v40 = vld [vmem:[#allocation7 + $0x68] sm:$0xff]  ;;  %v944_v41 = vpack.c.bf16 %v312_v38, %v311_v37  ;;  %v314_v44 = vld [vmem:[#allocation5 + $0x78] sm:$0xff]  ;;  %v404_v45 = vld [vmem:[#allocation7 + $0x70] sm:$0xff]  ;;  %p1241_p0 = pnand %p1240_p9, %p1234_p3 }
  0x92   : > { %v976_v42 = vpack.c.bf16 %v403_v40, %v402_v39  ;;  %v405_v46 = vld [vmem:[#allocation7 + $0x78] sm:$0xff]  ;;  %v948_v47 = vpack.c.bf16 %v314_v44, %v313_v43  ;;  %v501_v49 = vld [vmem:[#allocation8] sm:$0xff]  ;;  %v502_v50 = vld [vmem:[#allocation8 + $0x8] sm:$0xff] }
  0x93   : > { %931 = vmatpush3.bf16.msra.mxu0 %v928_v16  ;;  %v980_v48 = vpack.c.bf16 %v405_v46, %v404_v45  ;;  %v984_v51 = vpack.c.bf16 %v502_v50, %v501_v49  ;;  %v503_v52 = vld [vmem:[#allocation8 + $0x10] sm:$0xff]  ;;  %v504_v53 = vld [vmem:[#allocation8 + $0x18] sm:$0xff]  ;;  %v505_v56 = vld [vmem:[#allocation8 + $0x20] sm:$0xff] }
  0x94   : > { %963 = vmatpush3.bf16.msra.mxu1 %v960_v17  ;;  %933 = vmatprep.subr.bf16.mxu0 %v932_v22  ;;  %v298_v54 = vld [vmem:[%s1584_s6 + $0x8] sm:$0xff]  ;;  %v988_v55 = vpack.c.bf16 %v504_v53, %v503_v52  ;;  %v507_v59 = vld [vmem:[#allocation8 + $0x30] sm:$0xff]  ;;  %v509_v62 = vld [vmem:[#allocation8 + $0x40] sm:$0xff] }
  0x95   : > { %965 = vmatprep.subr.bf16.mxu1 %v964_v23  ;;  %v506_v57 = vld [vmem:[#allocation8 + $0x28] sm:$0xff]  ;;  %v508_v60 = vld [vmem:[#allocation8 + $0x38] sm:$0xff]  ;;  %v511_v1 = vld [vmem:[#allocation8 + $0x50] sm:$0xff] }
  0x96   : > { %v992_v58 = vpack.c.bf16 %v506_v57, %v505_v56  ;;  %v996_v61 = vpack.c.bf16 %v508_v60, %v507_v59  ;;  %v510_v63 = vld [vmem:[#allocation8 + $0x48] sm:$0xff]  ;;  %v512_v2 = vld [vmem:[#allocation8 + $0x58] sm:$0xff]  ;;  %v513_v3 = vld [vmem:[#allocation8 + $0x60] sm:$0xff] }
  0x97   : > { %935 = vmatpush3.bf16.msra.mxu0 %v932_v22  ;;  %v1000_v0 = vpack.c.bf16 %v510_v63, %v509_v62  ;;  %v1004_v4 = vpack.c.bf16 %v512_v2, %v511_v1  ;;  %v514_v5 = vld [vmem:[#allocation8 + $0x68] sm:$0xff]  ;;  %v515_v7 = vld [vmem:[#allocation8 + $0x70] sm:$0xff]  ;;  %v516_v8 = vld [vmem:[#allocation8 + $0x78] sm:$0xff] }
  0x98   : > { %967 = vmatpush3.bf16.msra.mxu1 %v964_v23  ;;  %937 = vmatprep.subr.bf16.mxu0 %v936_v29  ;;  %v1008_v6 = vpack.c.bf16 %v514_v5, %v513_v3  ;;  %v1012_v9 = vpack.c.bf16 %v516_v8, %v515_v7 }
  0x99   : > { %969 = vmatprep.subr.bf16.mxu1 %v968_v30 }
  0x9b   : > { %939 = vmatpush3.bf16.msra.mxu0 %v936_v29 }
  0x9c   : > { %971 = vmatpush3.bf16.msra.mxu1 %v968_v30  ;;  %941 = vmatprep.subr.bf16.mxu0 %v940_v35 }
  0x9d   : > { %973 = vmatprep.subr.bf16.mxu1 %v972_v36 }
  0x9f   : > { %943 = vmatpush3.bf16.msra.mxu0 %v940_v35 }
  0xa0   : > { %975 = vmatpush3.bf16.msra.mxu1 %v972_v36  ;;  %945 = vmatprep.subr.bf16.mxu0 %v944_v41 }
  0xa1   : > { %977 = vmatprep.subr.bf16.mxu1 %v976_v42 }
  0xa3   : > { %947 = vmatpush3.bf16.msra.mxu0 %v944_v41 }
  0xa4   : > { %979 = vmatpush3.bf16.msra.mxu1 %v976_v42  ;;  %949 = vmatprep.subr.bf16.mxu0 %v948_v47 }
  0xa5   : > { %981 = vmatprep.subr.bf16.mxu1 %v980_v48 }
  0xa7   : > { %951 = vmatpush3.bf16.msra.mxu0 %v948_v47 }
  0xa8   : > { %983 = vmatpush3.bf16.msra.mxu1 %v980_v48  ;;  %985 = vmatprep.subr.bf16.mxu0 %v984_v51 }
  0xaa   : > { %848 = vmatmul.mubr.f32.vlgmr.msra.gmra.mrb[0].mxu0 %v298_v54 }
  0xab   : > { %883 = vmatmul.mubr.f32.vlgmr.msra.gmra.mrb[0].mxu1 %v298_v54  ;;  %987 = vmatpush3.bf16.msra.mxu0 %v984_v51 }
  0xac   : > { %989 = vmatprep.subr.bf16.mxu0 %v988_v55 }
  0xaf   : > { %991 = vmatpush3.bf16.msra.mxu0 %v988_v55 }
  0xb0   : > { %993 = vmatprep.subr.bf16.mxu0 %v992_v58 }
  0xb3   : > { %995 = vmatpush3.bf16.msra.mxu0 %v992_v58 }
  0xb4   : > { %997 = vmatprep.subr.bf16.mxu0 %v996_v61 }
  0xb7   : > { %999 = vmatpush3.bf16.msra.mxu0 %v996_v61 }
  0xb8   : > { %1001 = vmatprep.subr.bf16.mxu0 %v1000_v0 }
  0xbb   : > { %1003 = vmatpush3.bf16.msra.mxu0 %v1000_v0 }
  0xbc   : > { %1005 = vmatprep.subr.bf16.mxu0 %v1004_v4 }
  0xbf   : > { %1007 = vmatpush3.bf16.msra.mxu0 %v1004_v4 }
  0xc0   : > { %1009 = vmatprep.subr.bf16.mxu0 %v1008_v6 }
  0xc3   : > { %1011 = vmatpush3.bf16.msra.mxu0 %v1008_v6 }
  0xc4   : > { %1013 = vmatprep.subr.bf16.mxu0 %v1012_v9 }
  0xc7   : > { %1015 = vmatpush3.bf16.msra.mxu0 %v1012_v9 }
 0x17d   : > { %v849_v10 = vpop.f32.mrb[0].mxu0 }
 0x17e   : > { %v482_v11 = vmul.f32 %v849_v10, %v849_v10  ;;  %v884_v12 = vpop.f32.mrb[0].mxu1  ;;  %v381_v13 = vpop.f32.mrb[1].mxu0 }
 0x17f   : > { %v484_v14 = vmul.f32 %v884_v12, %v884_v12  ;;  %v481_v15 = vmul.f32 %v381_v13, %v381_v13  ;;  %v472_v16 = vpop.f32.mrb[1].mxu1 }
 0x180   : > { %v483_v17 = vmul.f32 %v472_v16, %v472_v16 }
 0x181   : > { %v486_v18 = vadd.f32 %v484_v14, %v482_v11 }
 0x182   : > { %v485_v19 = vadd.f32 %v483_v17, %v481_v15 }
 0x183   : > { %1113 = vrsqrt.f32 %v486_v18  ;;  %vm496_vm0 = vcmp.eq.f32.partialorder %v486_v18, inf  ;;  %v499_v27 = vand.u32 2147483648, %v486_v18  ;;  %vm498_vm3 = vcmp.eq.f32.partialorder %v486_v18, 0.0 }
 0x184   : > { %1115 = vrsqrt.f32 %v485_v19  ;;  %vm489_vm1 = vcmp.eq.f32.partialorder %v485_v19, inf  ;;  %v492_v24 = vand.u32 2147483648, %v485_v19  ;;  %vm491_vm2 = vcmp.eq.f32.partialorder %v485_v19, 0.0 }
 0x18d   : > { %v1114_v20 = vpop.eup %1113 }
 0x18e   : > { %v1116_v21 = vpop.eup %1115  ;;  %v495_v22 = vmul.f32 %v1114_v20, %v486_v18 }
 0x18f   : > { %v488_v23 = vmul.f32 %v1116_v21, %v485_v19 }
 0x190   : > { %v497_v25 = vsel %vm496_vm0, %v486_v18, %v495_v22 }
 0x191   : > { %v490_v26 = vsel %vm489_vm1, %v485_v19, %v488_v23  ;;  %v500_v29 = vsel %vm498_vm3, %v499_v27, %v497_v25 }
 0x192   : > { %v493_v28 = vsel %vm491_vm2, %v492_v24, %v490_v26 }
 0x193   : > { %917 = vmatprep.mubr.f32.mxu0 %v493_v28 }
 0x194   : > { %918 = vmatmul.mubr.f32.vlgmr.msra.gmra.mrb[2].mxu0 %v500_v29 }
 0x267   : > { %v919_v30 = vpop.f32.mrb[2].mxu0 }
 0x268   : > { %597 = vst [vmem:[%s293_s23 + $0x8] sm:$0xff] %v919_v30  ;;  %v583_v31 = vpop.f32.mrb[3].mxu0 }
 0x269   : > { %596 = vst [vmem:[%s293_s23] sm:$0xff] %v583_v31 }
 0x26a   : > { %1244 = shalt.err (!%p1241_p0)
}
 0x26b   : > { %s1245_s28 = scalar_lea.hbm %s1608_s24, 256  ;;  %s1249_s12 = scalar_lea.hbm %s1661_s4, 512 }
 0x26c   : > { %p1246_p4 = scmp.ne.s32.totalorder %s1608_s24, %s1245_s28  ;;  %p1250_p12 = scmp.lt.u32.totalorder %s1608_s24, %s1661_s4 }
 0x26d   : > { %p1251_p1 = scmp.lt.u32.totalorder %s1249_s12, %s1245_s28  ;;  %p1253_p13 = scmp.lt.u32.totalorder %s1245_s28, %s1608_s24 }
 0x26e   : > { %p1247_p2 = pnand %p1246_p4, %p1517_p10 }
 0x26f   : > { %p1252_p11 = por %p1251_p1, %p1250_p12 }
 0x270   : > { %p1248_p8 = pneg %p1247_p2 }
 0x271   : > { %p1254_p6 = por %p1253_p13, %p1252_p11 }
 0x273   : > { %p1255_p3 = pnand %p1254_p6, %p1248_p8 }
 0x275   : > { %1258 = shalt.err (!%p1255_p3)
}
 0x276   : > { %s1330_s23 = smov 128   ;;  %s1331_s27 = smov 8  }
 0x277   : > { %1030 = dma.vmem_to_hbm [thread:$0]  (%p1517_p10), %s1603_s25, 256, %s1608_s24, %s609_s29, %s1330_s23, %s1330_s23, %s1331_s27  }
 0x278 PF: > { %s1681_s5 = sld [smem:[#allocation15_spill]]  ;;  %s637_s7 = sand.u32 1, %s1301_s15  }
 0x279   : > { %p1683_p7 = scmp.ge.s32.totalorder %s1321_s20, 2  ;;  %s638_s26 = scalar_lea.sflag [#allocation4], %s637_s7 }
 0x27e   : > { %p1682_p5 = scmp.ne.s32.totalorder %s1681_s5, 0 }
 0x280   : > { %p1047_p9 = pnand %p1683_p7, %p1682_p5 }
 0x282   : > { %1296 = dma.done.wait (!%p1047_p9), %s638_s26, 256  }
 0x283   : > { %1298 = vsyncadd (!%p1047_p9), %s638_s26, 4294967040  ;;  %s22_s20 = sadd.s32 1, %s1321_s20   ;;  %s1684_s15 = smov %s1305_s16 }
 0x284   : > { %p19_p0 = scmp.ge.s32.totalorder %s22_s20, 4   ;;  %s1685_s16 = smov %s1309_s17 }
 0x285   : > { %s1686_s17 = smov %s1529_s13  ;;  %s1687_s18 = smov %s1317_s19 }
 0x286   : > { %s1688_s19 = smov %s1690_s30  ;;  %21 = sbr.rel (!%p19_p0) target bundleno = 8 (0x8), region = 104 }
 0x28d   :  { %643 = vsyncpa [#allocation3], 1 }
 0x28e   :  { %645 = vsyncpa [#allocation3 + $0x1], 1 }
 0x28f   :  { %646 = vsyncpa [#allocation6], 1 }
 0x290   :  { %647 = vsyncpa [#allocation9], 1 }
 0x291   :  { %648 = vsyncpa [#allocation4], 1 }
 0x292   :  { %650 = vsyncpa [#allocation4 + $0x1], 1 }

</bundles_post_ra>
